<compile_context>
chip_gen: v5e
topology: v5e:2x2
jax: 0.10.0
libtpu: 0.0.40
codegen_flags: <defaults>
</compile_context>

<pallas_src>
import functools

import numpy as np
import jax
import jax.numpy as jnp
from jax.experimental import pallas as pl
from jax.experimental.pallas import tpu as pltpu


def _round_up(n, m):
    return ((n + m - 1) // m) * m


def _cdiv(a, b):
    return -(-a // b)


def _tpu_generation_info():
    """(mxu_width, num_tensorcores, vmem_capacity_bytes) with safe fallbacks."""
    kind = ""
    try:
        kind = jax.devices()[0].device_kind.lower()
    except Exception:
        pass
    newer = ("v6" in kind) or ("v7" in kind)
    mxu = 256 if newer else 128
    num_tc = 2 if "v7" in kind else 1
    vmem_cap = (64 << 20) if "v7" in kind else (128 << 20)
    try:
        vmem_cap = int(pltpu.get_tpu_info().vmem_capacity_bytes)
    except Exception:
        pass
    return mxu, num_tc, vmem_cap


def _feature_pad(d, mxu):
    """Pad a feature dim to 128 lanes; widen to 256 on 256-wide MXUs when cheap."""
    p = _round_up(max(int(d), 1), 128)
    if mxu >= 256 and p % 256 != 0:
        p256 = _round_up(d, 256)
        if (p256 - p) * 8 <= p:  # <= ~12.5% extra over the 128-aligned size
            p = p256
    return p


# --------------------------------------------------------------------------
# Fused whole-MLP kernel (weights VMEM-resident, intermediates never hit HBM)
# --------------------------------------------------------------------------
def _mlp_fused_kernel(*refs, num_linears, slope, compute_dtype):
    # refs = [x, w0, b0, w1, b1, ..., w_{L-1}, b_{L-1}, out]
    x_ref = refs[0]
    wb = refs[1:1 + 2 * num_linears]
    o_ref = refs[1 + 2 * num_linears]

    h = x_ref[...]                                    # (tb, din_p) in compute_dtype
    for l in range(num_linears):
        w_ref, b_ref = wb[2 * l], wb[2 * l + 1]
        y = jnp.dot(h, w_ref[...], preferred_element_type=jnp.float32)  # bf16 MXU, f32 acc
        y = y + b_ref[...]                            # f32 bias add
        if l < num_linears - 1:
            y = jnp.where(y >= 0, y, slope * y)       # LeakyReLU; padded lanes stay 0
            h = y.astype(compute_dtype)               # back to bf16 for the next MXU pass
        else:
            o_ref[...] = y.astype(o_ref.dtype)


# --------------------------------------------------------------------------
# Fallback per-layer tiled matmul (+ bias + LeakyReLU) when weights are too
# large to stay VMEM-resident.
# --------------------------------------------------------------------------
def _layer_matmul_kernel(x_ref, w_ref, b_ref, o_ref, acc_ref, *, apply_act, slope):
    k = pl.program_id(2)

    @pl.when(k == 0)
    def _():
        acc_ref[...] = jnp.zeros_like(acc_ref)

    acc_ref[...] += jnp.dot(x_ref[...], w_ref[...], preferred_element_type=jnp.float32)

    @pl.when(k == pl.num_programs(2) - 1)
    def _():
        y = acc_ref[...] + b_ref[...]
        if apply_act:
            y = jnp.where(y >= 0, y, slope * y)
        o_ref[...] = y.astype(o_ref.dtype)


def _pick_tile(dim, pref):
    for t in (pref, 512, 256, 128):
        if t <= dim and dim % t == 0:
            return t
    return dim


def _mlp2_layered(x_p, padded, *, slope, compute_dtype, vmem_cap, tm):
    """One tiled-matmul pallas_call per layer; x_p already padded & cast."""
    B_p = x_p.shape[0]
    vmem_limit = int(0.8 * vmem_cap)
    h = x_p
    for l, (wp, bp) in enumerate(padded):
        K, N = wp.shape
        tk = _pick_tile(K, 512)
        tn = _pick_tile(N, 512)
        last = l == len(padded) - 1
        out_dtype = jnp.float32 if last else compute_dtype
        kernel = functools.partial(_layer_matmul_kernel, apply_act=not last, slope=slope)
        h = pl.pallas_call(
            kernel,
            out_shape=jax.ShapeDtypeStruct((B_p, N), out_dtype),
            grid_spec=pltpu.PrefetchScalarGridSpec(
                num_scalar_prefetch=0,
                grid=(B_p // tm, N // tn, K // tk),
                in_specs=[pl.BlockSpec((tm, tk), lambda i, j, k: (i, k)),
                          pl.BlockSpec((tk, tn), lambda i, j, k: (k, j)),
                          pl.BlockSpec((1, tn), lambda i, j, k: (0, j))],
                out_specs=pl.BlockSpec((tm, tn), lambda i, j, k: (i, j)),
                scratch_shapes=[pltpu.VMEM((tm, tn), jnp.float32)],
            ),
            compiler_params=pltpu.CompilerParams(
                dimension_semantics=("parallel", "parallel", "arbitrary"),
                vmem_limit_bytes=vmem_limit,
            ),
        )(h, wp, bp)
    return h


# --------------------------------------------------------------------------
# Public wrapper
# --------------------------------------------------------------------------
def mlp2_forward(x, params, *, leaky_relu_slope=0.2, tile_b=512,
                 compute_dtype=jnp.bfloat16):
    """x: [B, input_dim] -> [B, output_dim]; matches MLP2.forward."""
    B, Din = x.shape
    num_linears = len(params)
    Dout = params[-1][0].shape[1]

    mxu, num_tc, vmem_cap = _tpu_generation_info()
    cbytes = np.dtype(compute_dtype).itemsize

    # ---- pad feature dims (zero padding is inert through LeakyReLU) ----
    din_p = _feature_pad(Din, mxu)
    dout_p = _feature_pad(Dout, mxu)
    out_dims_p = []
    for i, (w, _) in enumerate(params):
        out_dims_p.append(dout_p if i == num_linears - 1 else _feature_pad(w.shape[1], mxu))

    padded = []
    wbytes = 0
    for i, (w, b) in enumerate(params):
        in_p = din_p if i == 0 else out_dims_p[i - 1]
        out_p = out_dims_p[i]
        wp = jnp.zeros((in_p, out_p), compute_dtype)
        wp = wp.at[:w.shape[0], :w.shape[1]].set(w.astype(compute_dtype))
        bp = jnp.zeros((1, out_p), jnp.float32).at[:, :b.shape[1]].set(b.astype(jnp.float32))
        padded.append((wp, bp))
        wbytes += wp.size * cbytes + bp.size * 4

    h_p = max(out_dims_p[:-1] or [dout_p])

    if wbytes <= int(0.5 * vmem_cap):
        # ---- fast path: everything resident, single fused kernel ----
        def act_bytes(tb):
            return (2 * tb * din_p * cbytes      # double-buffered input tile
                    + 2 * tb * dout_p * 4        # double-buffered output tile
                    + 3 * tb * h_p * 4)          # headroom for live intermediates

        b8 = _round_up(B, 8)
        max_steps = b8 // 8
        nsteps = max(1, _cdiv(b8, max(8, tile_b)))
        if num_tc > 1 and max_steps >= num_tc:
            nsteps = max(nsteps, num_tc)         # v7x: keep both TensorCores busy
        nsteps = min(nsteps, max_steps)
        tb = _round_up(_cdiv(B, nsteps), 8)
        while nsteps < max_steps and wbytes + act_bytes(tb) > int(0.6 * vmem_cap):
            nsteps += 1
            tb = _round_up(_cdiv(B, nsteps), 8)

        B_p = nsteps * tb
        x_p = jnp.zeros((B_p, din_p), compute_dtype)
        x_p = x_p.at[:B, :Din].set(x.astype(compute_dtype))
        flat_wb = [a for pair in padded for a in pair]

        vmem_limit = int(min(int(0.8 * vmem_cap),
                             max(16 << 20,
                                 int(1.5 * (wbytes + act_bytes(tb))) + (2 << 20))))

        kernel = functools.partial(_mlp_fused_kernel, num_linears=num_linears,
                                   slope=leaky_relu_slope, compute_dtype=compute_dtype)

        def run(single_buffer_weights):
            def resident_spec(shape):
                if single_buffer_weights:
                    # Constant index_map => never re-fetched; 1 buffer is enough.
                    return pl.BlockSpec(shape, lambda i: (0, 0),
                                        pipeline_mode=pl.Buffered(1))
                return pl.BlockSpec(shape, lambda i: (0, 0))

            in_specs = [pl.BlockSpec((tb, din_p), lambda i: (i, 0))]
            for wp, bp in padded:
                in_specs.append(resident_spec(wp.shape))
                in_specs.append(resident_spec(bp.shape))

            return pl.pallas_call(
                kernel,
                out_shape=jax.ShapeDtypeStruct((B_p, dout_p), jnp.float32),
                grid_spec=pltpu.PrefetchScalarGridSpec(
                    num_scalar_prefetch=0,
                    grid=(nsteps,),
                    in_specs=in_specs,
                    out_specs=pl.BlockSpec((tb, dout_p), lambda i: (i, 0)),
                ),
                compiler_params=pltpu.CompilerParams(
                    dimension_semantics=("parallel",),
                    vmem_limit_bytes=vmem_limit,
                ),
            )(x_p, *flat_wb)

        try:
            out_p = jax.block_until_ready(run(True))
        except Exception:
            # JAX version without BlockSpec(pipeline_mode=...): default buffering.
            out_p = run(False)
    else:
        # ---- weights too large for residency: per-layer tiled matmuls ----
        tm = min(512, _round_up(B, 8))
        B_p = _round_up(B, tm)
        x_p = jnp.zeros((B_p, din_p), compute_dtype)
        x_p = x_p.at[:B, :Din].set(x.astype(compute_dtype))
        out_p = _mlp2_layered(x_p, padded, slope=leaky_relu_slope,
                              compute_dtype=compute_dtype, vmem_cap=vmem_cap, tm=tm)

    return out_p[:B, :Dout].astype(x.dtype)


# --------------------------------------------------------------------------
# Parameter init (mimics nn.Linear's uniform(-1/sqrt(fan_in))) and reference
# --------------------------------------------------------------------------
def init_mlp2_params(key, input_dim, hidden_dim, output_dim, num_layers):
    dims = []
    for l in range(num_layers):
        dims.append((input_dim, hidden_dim) if l == 0 else (hidden_dim, hidden_dim))
    dims.append((hidden_dim, output_dim))

    params = []
    for (din, dout) in dims:
        key, kw, kb = jax.random.split(key, 3)
        bound = 1.0 / float(np.sqrt(din))
        w = jax.random.uniform(kw, (din, dout), jnp.float32, -bound, bound)  # [in, out]
        b = jax.random.uniform(kb, (1, dout), jnp.float32, -bound, bound)
        params.append((w, b))
    return params


def mlp2_reference(x, params, *, leaky_relu_slope=0.2):
    h = x
    for i, (w, b) in enumerate(params):
        h = jnp.dot(h, w, preferred_element_type=jnp.float32) + b
        if i != len(params) - 1:
            h = jnp.where(h >= 0, h, leaky_relu_slope * h)
    return h


if __name__ == "__main__":
    input_dim, hidden_dim, output_dim, num_layers = 16, 32, 8, 3
    batch = 8

    key = jax.random.PRNGKey(0)
    key, kx = jax.random.split(key)
    x = jax.random.normal(kx, (batch, input_dim), jnp.float32)
    params = init_mlp2_params(key, input_dim, hidden_dim, output_dim, num_layers)

    out = jax.block_until_ready(mlp2_forward(x, params))
    ref = mlp2_reference(x, params)
    assert out.shape == (batch, output_dim)
    assert jnp.allclose(out, ref, atol=5e-2, rtol=5e-2), "mismatch vs reference (bf16 MXU)"

    # Second config: exercises batch padding and a multi-step "parallel" grid.
    x2 = jax.random.normal(jax.random.PRNGKey(1), (300, input_dim), jnp.float32)
    out2 = jax.block_until_ready(mlp2_forward(x2, params, tile_b=128))
    ref2 = mlp2_reference(x2, params)
    assert out2.shape == (300, output_dim)
    assert jnp.allclose(out2, ref2, atol=5e-2, rtol=5e-2), "mismatch vs reference (tiled batch)"

    print("KERNEL_OK")
</pallas_src>

<mosaic_0001>
module attributes {stable_mosaic.version = 11 : i64} {
  func.func @_mlp_fused_kernel(%arg0: i32, %arg1: memref<8x128xbf16, #tpu.memory_space<vmem>>, %arg2: memref<128x128xbf16, #tpu.memory_space<vmem>>, %arg3: memref<1x128xf32, #tpu.memory_space<vmem>>, %arg4: memref<128x128xbf16, #tpu.memory_space<vmem>>, %arg5: memref<1x128xf32, #tpu.memory_space<vmem>>, %arg6: memref<128x128xbf16, #tpu.memory_space<vmem>>, %arg7: memref<1x128xf32, #tpu.memory_space<vmem>>, %arg8: memref<128x128xbf16, #tpu.memory_space<vmem>>, %arg9: memref<1x128xf32, #tpu.memory_space<vmem>>, %arg10: memref<8x128xf32, #tpu.memory_space<vmem>>) attributes {dimension_semantics = [#tpu.dimension_semantics<parallel>], iteration_bounds = array<i64: 1>, scalar_prefetch = 0 : i64, scratch_operands = 0 : i64, tpu.core_type = #tpu.core_type<tc>, window_params = [{transform_indices = @transform_0, window_bounds = array<i64: 8, 128>}, {pipeline_mode = #tpu.pipeline_mode<synchronous>, transform_indices = @transform_1, window_bounds = array<i64: 128, 128>}, {pipeline_mode = #tpu.pipeline_mode<synchronous>, transform_indices = @transform_2, window_bounds = array<i64: 1, 128>}, {pipeline_mode = #tpu.pipeline_mode<synchronous>, transform_indices = @transform_3, window_bounds = array<i64: 128, 128>}, {pipeline_mode = #tpu.pipeline_mode<synchronous>, transform_indices = @transform_4, window_bounds = array<i64: 1, 128>}, {pipeline_mode = #tpu.pipeline_mode<synchronous>, transform_indices = @transform_5, window_bounds = array<i64: 128, 128>}, {pipeline_mode = #tpu.pipeline_mode<synchronous>, transform_indices = @transform_6, window_bounds = array<i64: 1, 128>}, {pipeline_mode = #tpu.pipeline_mode<synchronous>, transform_indices = @transform_7, window_bounds = array<i64: 128, 128>}, {pipeline_mode = #tpu.pipeline_mode<synchronous>, transform_indices = @transform_8, window_bounds = array<i64: 1, 128>}, {transform_indices = @transform_9, window_bounds = array<i64: 8, 128>}]} {
    %c0 = arith.constant 0 : index
    %c0_0 = arith.constant 0 : index
    %0 = vector.load %arg1[%c0, %c0_0] : memref<8x128xbf16, #tpu.memory_space<vmem>>, vector<8x128xbf16>
    %c0_1 = arith.constant 0 : index
    %c0_2 = arith.constant 0 : index
    %1 = vector.load %arg2[%c0_1, %c0_2] : memref<128x128xbf16, #tpu.memory_space<vmem>>, vector<128x128xbf16>
    %cst = arith.constant dense<0.000000e+00> : vector<8x128xf32>
    %2 = tpu.matmul %0, %1, %cst {dimension_numbers = #tpu.dot_dimension_numbers<[1], [0], [0], [1], [0, 0, 1, 1], [], []>} : vector<8x128xbf16>, vector<128x128xbf16>, vector<8x128xf32> -> vector<8x128xf32>
    %c0_3 = arith.constant 0 : index
    %c0_4 = arith.constant 0 : index
    %3 = vector.load %arg3[%c0_3, %c0_4] : memref<1x128xf32, #tpu.memory_space<vmem>>, vector<1x128xf32>
    %4 = vector.broadcast %3 : vector<1x128xf32> to vector<8x128xf32>
    %5 = arith.addf %2, %4 : vector<8x128xf32>
    %cst_5 = arith.constant 0.000000e+00 : f32
    %6 = vector.broadcast %cst_5 : f32 to vector<8x128xf32>
    %7 = arith.cmpf oge, %5, %6 : vector<8x128xf32>
    %cst_6 = arith.constant 2.000000e-01 : f32
    %8 = vector.broadcast %cst_6 : f32 to vector<8x128xf32>
    %9 = arith.mulf %8, %5 : vector<8x128xf32>
    %10 = arith.select %7, %5, %9 : vector<8x128xi1>, vector<8x128xf32>
    %11 = arith.truncf %10 : vector<8x128xf32> to vector<8x128xbf16>
    %c0_7 = arith.constant 0 : index
    %c0_8 = arith.constant 0 : index
    %12 = vector.load %arg4[%c0_7, %c0_8] : memref<128x128xbf16, #tpu.memory_space<vmem>>, vector<128x128xbf16>
    %cst_9 = arith.constant dense<0.000000e+00> : vector<8x128xf32>
    %13 = tpu.matmul %11, %12, %cst_9 {dimension_numbers = #tpu.dot_dimension_numbers<[1], [0], [0], [1], [0, 0, 1, 1], [], []>} : vector<8x128xbf16>, vector<128x128xbf16>, vector<8x128xf32> -> vector<8x128xf32>
    %c0_10 = arith.constant 0 : index
    %c0_11 = arith.constant 0 : index
    %14 = vector.load %arg5[%c0_10, %c0_11] : memref<1x128xf32, #tpu.memory_space<vmem>>, vector<1x128xf32>
    %15 = vector.broadcast %14 : vector<1x128xf32> to vector<8x128xf32>
    %16 = arith.addf %13, %15 : vector<8x128xf32>
    %cst_12 = arith.constant 0.000000e+00 : f32
    %17 = vector.broadcast %cst_12 : f32 to vector<8x128xf32>
    %18 = arith.cmpf oge, %16, %17 : vector<8x128xf32>
    %cst_13 = arith.constant 2.000000e-01 : f32
    %19 = vector.broadcast %cst_13 : f32 to vector<8x128xf32>
    %20 = arith.mulf %19, %16 : vector<8x128xf32>
    %21 = arith.select %18, %16, %20 : vector<8x128xi1>, vector<8x128xf32>
    %22 = arith.truncf %21 : vector<8x128xf32> to vector<8x128xbf16>
    %c0_14 = arith.constant 0 : index
    %c0_15 = arith.constant 0 : index
    %23 = vector.load %arg6[%c0_14, %c0_15] : memref<128x128xbf16, #tpu.memory_space<vmem>>, vector<128x128xbf16>
    %cst_16 = arith.constant dense<0.000000e+00> : vector<8x128xf32>
    %24 = tpu.matmul %22, %23, %cst_16 {dimension_numbers = #tpu.dot_dimension_numbers<[1], [0], [0], [1], [0, 0, 1, 1], [], []>} : vector<8x128xbf16>, vector<128x128xbf16>, vector<8x128xf32> -> vector<8x128xf32>
    %c0_17 = arith.constant 0 : index
    %c0_18 = arith.constant 0 : index
    %25 = vector.load %arg7[%c0_17, %c0_18] : memref<1x128xf32, #tpu.memory_space<vmem>>, vector<1x128xf32>
    %26 = vector.broadcast %25 : vector<1x128xf32> to vector<8x128xf32>
    %27 = arith.addf %24, %26 : vector<8x128xf32>
    %cst_19 = arith.constant 0.000000e+00 : f32
    %28 = vector.broadcast %cst_19 : f32 to vector<8x128xf32>
    %29 = arith.cmpf oge, %27, %28 : vector<8x128xf32>
    %cst_20 = arith.constant 2.000000e-01 : f32
    %30 = vector.broadcast %cst_20 : f32 to vector<8x128xf32>
    %31 = arith.mulf %30, %27 : vector<8x128xf32>
    %32 = arith.select %29, %27, %31 : vector<8x128xi1>, vector<8x128xf32>
    %33 = arith.truncf %32 : vector<8x128xf32> to vector<8x128xbf16>
    %c0_21 = arith.constant 0 : index
    %c0_22 = arith.constant 0 : index
    %34 = vector.load %arg8[%c0_21, %c0_22] : memref<128x128xbf16, #tpu.memory_space<vmem>>, vector<128x128xbf16>
    %cst_23 = arith.constant dense<0.000000e+00> : vector<8x128xf32>
    %35 = tpu.matmul %33, %34, %cst_23 {dimension_numbers = #tpu.dot_dimension_numbers<[1], [0], [0], [1], [0, 0, 1, 1], [], []>} : vector<8x128xbf16>, vector<128x128xbf16>, vector<8x128xf32> -> vector<8x128xf32>
    %c0_24 = arith.constant 0 : index
    %c0_25 = arith.constant 0 : index
    %36 = vector.load %arg9[%c0_24, %c0_25] : memref<1x128xf32, #tpu.memory_space<vmem>>, vector<1x128xf32>
    %37 = vector.broadcast %36 : vector<1x128xf32> to vector<8x128xf32>
    %38 = arith.addf %35, %37 : vector<8x128xf32>
    %c0_26 = arith.constant 0 : index
    %c0_27 = arith.constant 0 : index
    %39 = vector.load %arg10[%c0_26, %c0_27] : memref<8x128xf32, #tpu.memory_space<vmem>>, vector<8x128xf32>
    tpu.vector_store %arg10[%c0_26, %c0_27], %38 {strides = array<i32>} : memref<8x128xf32, #tpu.memory_space<vmem>>, vector<8x128xf32>,
    return
  }
  func.func @transform_0(%arg0: i32) -> (i32, i32) {
    %c0_i32 = arith.constant 0 : i32
    %c0_i32_0 = arith.constant 0 : i32
    return %arg0, %c0_i32 : i32, i32
  }
  func.func @transform_1(%arg0: i32) -> (i32, i32) {
    %c0_i32 = arith.constant 0 : i32
    %c0_i32_0 = arith.constant 0 : i32
    %c0_i32_1 = arith.constant 0 : i32
    return %c0_i32, %c0_i32_0 : i32, i32
  }
  func.func @transform_2(%arg0: i32) -> (i32, i32) {
    %c0_i32 = arith.constant 0 : i32
    %c0_i32_0 = arith.constant 0 : i32
    %c0_i32_1 = arith.constant 0 : i32
    return %c0_i32, %c0_i32_0 : i32, i32
  }
  func.func @transform_3(%arg0: i32) -> (i32, i32) {
    %c0_i32 = arith.constant 0 : i32
    %c0_i32_0 = arith.constant 0 : i32
    %c0_i32_1 = arith.constant 0 : i32
    return %c0_i32, %c0_i32_0 : i32, i32
  }
  func.func @transform_4(%arg0: i32) -> (i32, i32) {
    %c0_i32 = arith.constant 0 : i32
    %c0_i32_0 = arith.constant 0 : i32
    %c0_i32_1 = arith.constant 0 : i32
    return %c0_i32, %c0_i32_0 : i32, i32
  }
  func.func @transform_5(%arg0: i32) -> (i32, i32) {
    %c0_i32 = arith.constant 0 : i32
    %c0_i32_0 = arith.constant 0 : i32
    %c0_i32_1 = arith.constant 0 : i32
    return %c0_i32, %c0_i32_0 : i32, i32
  }
  func.func @transform_6(%arg0: i32) -> (i32, i32) {
    %c0_i32 = arith.constant 0 : i32
    %c0_i32_0 = arith.constant 0 : i32
    %c0_i32_1 = arith.constant 0 : i32
    return %c0_i32, %c0_i32_0 : i32, i32
  }
  func.func @transform_7(%arg0: i32) -> (i32, i32) {
    %c0_i32 = arith.constant 0 : i32
    %c0_i32_0 = arith.constant 0 : i32
    %c0_i32_1 = arith.constant 0 : i32
    return %c0_i32, %c0_i32_0 : i32, i32
  }
  func.func @transform_8(%arg0: i32) -> (i32, i32) {
    %c0_i32 = arith.constant 0 : i32
    %c0_i32_0 = arith.constant 0 : i32
    %c0_i32_1 = arith.constant 0 : i32
    return %c0_i32, %c0_i32_0 : i32, i32
  }
  func.func @transform_9(%arg0: i32) -> (i32, i32) {
    %c0_i32 = arith.constant 0 : i32
    %c0_i32_0 = arith.constant 0 : i32
    return %arg0, %c0_i32 : i32, i32
  }
}

module attributes {stable_mosaic.version = 11 : i64} {
  func.func @_mlp_fused_kernel(%arg0: i32, %arg1: memref<8x128xbf16, #tpu.memory_space<vmem>>, %arg2: memref<128x128xbf16, #tpu.memory_space<vmem>>, %arg3: memref<1x128xf32, #tpu.memory_space<vmem>>, %arg4: memref<128x128xbf16, #tpu.memory_space<vmem>>, %arg5: memref<1x128xf32, #tpu.memory_space<vmem>>, %arg6: memref<128x128xbf16, #tpu.memory_space<vmem>>, %arg7: memref<1x128xf32, #tpu.memory_space<vmem>>, %arg8: memref<128x128xbf16, #tpu.memory_space<vmem>>, %arg9: memref<1x128xf32, #tpu.memory_space<vmem>>, %arg10: memref<8x128xf32, #tpu.memory_space<vmem>>) attributes {dimension_semantics = [#tpu.dimension_semantics<parallel>], iteration_bounds = array<i64: 1>, scalar_prefetch = 0 : i64, scratch_operands = 0 : i64, tpu.core_type = #tpu.core_type<tc>, window_params = [{transform_indices = @transform_0, window_bounds = array<i64: 8, 128>}, {pipeline_mode = #tpu.pipeline_mode<synchronous>, transform_indices = @transform_1, window_bounds = array<i64: 128, 128>}, {pipeline_mode = #tpu.pipeline_mode<synchronous>, transform_indices = @transform_2, window_bounds = array<i64: 1, 128>}, {pipeline_mode = #tpu.pipeline_mode<synchronous>, transform_indices = @transform_3, window_bounds = array<i64: 128, 128>}, {pipeline_mode = #tpu.pipeline_mode<synchronous>, transform_indices = @transform_4, window_bounds = array<i64: 1, 128>}, {pipeline_mode = #tpu.pipeline_mode<synchronous>, transform_indices = @transform_5, window_bounds = array<i64: 128, 128>}, {pipeline_mode = #tpu.pipeline_mode<synchronous>, transform_indices = @transform_6, window_bounds = array<i64: 1, 128>}, {pipeline_mode = #tpu.pipeline_mode<synchronous>, transform_indices = @transform_7, window_bounds = array<i64: 128, 128>}, {pipeline_mode = #tpu.pipeline_mode<synchronous>, transform_indices = @transform_8, window_bounds = array<i64: 1, 128>}, {transform_indices = @transform_9, window_bounds = array<i64: 8, 128>}]} {
    %c0 = arith.constant 0 : index
    %c0_0 = arith.constant 0 : index
    %0 = vector.load %arg1[%c0, %c0_0] : memref<8x128xbf16, #tpu.memory_space<vmem>>, vector<8x128xbf16>
    %c0_1 = arith.constant 0 : index
    %c0_2 = arith.constant 0 : index
    %1 = vector.load %arg2[%c0_1, %c0_2] : memref<128x128xbf16, #tpu.memory_space<vmem>>, vector<128x128xbf16>
    %cst = arith.constant dense<0.000000e+00> : vector<8x128xf32>
    %2 = tpu.matmul %0, %1, %cst {dimension_numbers = #tpu.dot_dimension_numbers<[1], [0], [0], [1], [0, 0, 1, 1], [], []>} : vector<8x128xbf16>, vector<128x128xbf16>, vector<8x128xf32> -> vector<8x128xf32>
    %c0_3 = arith.constant 0 : index
    %c0_4 = arith.constant 0 : index
    %3 = vector.load %arg3[%c0_3, %c0_4] : memref<1x128xf32, #tpu.memory_space<vmem>>, vector<1x128xf32>
    %4 = vector.broadcast %3 : vector<1x128xf32> to vector<8x128xf32>
    %5 = arith.addf %2, %4 : vector<8x128xf32>
    %cst_5 = arith.constant 0.000000e+00 : f32
    %6 = vector.broadcast %cst_5 : f32 to vector<8x128xf32>
    %7 = arith.cmpf oge, %5, %6 : vector<8x128xf32>
    %cst_6 = arith.constant 2.000000e-01 : f32
    %8 = vector.broadcast %cst_6 : f32 to vector<8x128xf32>
    %9 = arith.mulf %8, %5 : vector<8x128xf32>
    %10 = arith.select %7, %5, %9 : vector<8x128xi1>, vector<8x128xf32>
    %11 = arith.truncf %10 : vector<8x128xf32> to vector<8x128xbf16>
    %c0_7 = arith.constant 0 : index
    %c0_8 = arith.constant 0 : index
    %12 = vector.load %arg4[%c0_7, %c0_8] : memref<128x128xbf16, #tpu.memory_space<vmem>>, vector<128x128xbf16>
    %cst_9 = arith.constant dense<0.000000e+00> : vector<8x128xf32>
    %13 = tpu.matmul %11, %12, %cst_9 {dimension_numbers = #tpu.dot_dimension_numbers<[1], [0], [0], [1], [0, 0, 1, 1], [], []>} : vector<8x128xbf16>, vector<128x128xbf16>, vector<8x128xf32> -> vector<8x128xf32>
    %c0_10 = arith.constant 0 : index
    %c0_11 = arith.constant 0 : index
    %14 = vector.load %arg5[%c0_10, %c0_11] : memref<1x128xf32, #tpu.memory_space<vmem>>, vector<1x128xf32>
    %15 = vector.broadcast %14 : vector<1x128xf32> to vector<8x128xf32>
    %16 = arith.addf %13, %15 : vector<8x128xf32>
    %cst_12 = arith.constant 0.000000e+00 : f32
    %17 = vector.broadcast %cst_12 : f32 to vector<8x128xf32>
    %18 = arith.cmpf oge, %16, %17 : vector<8x128xf32>
    %cst_13 = arith.constant 2.000000e-01 : f32
    %19 = vector.broadcast %cst_13 : f32 to vector<8x128xf32>
    %20 = arith.mulf %19, %16 : vector<8x128xf32>
    %21 = arith.select %18, %16, %20 : vector<8x128xi1>, vector<8x128xf32>
    %22 = arith.truncf %21 : vector<8x128xf32> to vector<8x128xbf16>
    %c0_14 = arith.constant 0 : index
    %c0_15 = arith.constant 0 : index
    %23 = vector.load %arg6[%c0_14, %c0_15] : memref<128x128xbf16, #tpu.memory_space<vmem>>, vector<128x128xbf16>
    %cst_16 = arith.constant dense<0.000000e+00> : vector<8x128xf32>
    %24 = tpu.matmul %22, %23, %cst_16 {dimension_numbers = #tpu.dot_dimension_numbers<[1], [0], [0], [1], [0, 0, 1, 1], [], []>} : vector<8x128xbf16>, vector<128x128xbf16>, vector<8x128xf32> -> vector<8x128xf32>
    %c0_17 = arith.constant 0 : index
    %c0_18 = arith.constant 0 : index
    %25 = vector.load %arg7[%c0_17, %c0_18] : memref<1x128xf32, #tpu.memory_space<vmem>>, vector<1x128xf32>
    %26 = vector.broadcast %25 : vector<1x128xf32> to vector<8x128xf32>
    %27 = arith.addf %24, %26 : vector<8x128xf32>
    %cst_19 = arith.constant 0.000000e+00 : f32
    %28 = vector.broadcast %cst_19 : f32 to vector<8x128xf32>
    %29 = arith.cmpf oge, %27, %28 : vector<8x128xf32>
    %cst_20 = arith.constant 2.000000e-01 : f32
    %30 = vector.broadcast %cst_20 : f32 to vector<8x128xf32>
    %31 = arith.mulf %30, %27 : vector<8x128xf32>
    %32 = arith.select %29, %27, %31 : vector<8x128xi1>, vector<8x128xf32>
    %33 = arith.truncf %32 : vector<8x128xf32> to vector<8x128xbf16>
    %c0_21 = arith.constant 0 : index
    %c0_22 = arith.constant 0 : index
    %34 = vector.load %arg8[%c0_21, %c0_22] : memref<128x128xbf16, #tpu.memory_space<vmem>>, vector<128x128xbf16>
    %cst_23 = arith.constant dense<0.000000e+00> : vector<8x128xf32>
    %35 = tpu.matmul %33, %34, %cst_23 {dimension_numbers = #tpu.dot_dimension_numbers<[1], [0], [0], [1], [0, 0, 1, 1], [], []>} : vector<8x128xbf16>, vector<128x128xbf16>, vector<8x128xf32> -> vector<8x128xf32>
    %c0_24 = arith.constant 0 : index
    %c0_25 = arith.constant 0 : index
    %36 = vector.load %arg9[%c0_24, %c0_25] : memref<1x128xf32, #tpu.memory_space<vmem>>, vector<1x128xf32>
    %37 = vector.broadcast %36 : vector<1x128xf32> to vector<8x128xf32>
    %38 = arith.addf %35, %37 : vector<8x128xf32>
    %c0_26 = arith.constant 0 : index
    %c0_27 = arith.constant 0 : index
    %39 = vector.load %arg10[%c0_26, %c0_27] : memref<8x128xf32, #tpu.memory_space<vmem>>, vector<8x128xf32>
    tpu.vector_store %arg10[%c0_26, %c0_27], %38 {strides = array<i32>} : memref<8x128xf32, #tpu.memory_space<vmem>>, vector<8x128xf32>,
    return
  }
  func.func @transform_0(%arg0: i32) -> (i32, i32) {
    %c0_i32 = arith.constant 0 : i32
    %c0_i32_0 = arith.constant 0 : i32
    return %arg0, %c0_i32 : i32, i32
  }
  func.func @transform_1(%arg0: i32) -> (i32, i32) {
    %c0_i32 = arith.constant 0 : i32
    %c0_i32_0 = arith.constant 0 : i32
    %c0_i32_1 = arith.constant 0 : i32
    return %c0_i32, %c0_i32_0 : i32, i32
  }
  func.func @transform_2(%arg0: i32) -> (i32, i32) {
    %c0_i32 = arith.constant 0 : i32
    %c0_i32_0 = arith.constant 0 : i32
    %c0_i32_1 = arith.constant 0 : i32
    return %c0_i32, %c0_i32_0 : i32, i32
  }
  func.func @transform_3(%arg0: i32) -> (i32, i32) {
    %c0_i32 = arith.constant 0 : i32
    %c0_i32_0 = arith.constant 0 : i32
    %c0_i32_1 = arith.constant 0 : i32
    return %c0_i32, %c0_i32_0 : i32, i32
  }
  func.func @transform_4(%arg0: i32) -> (i32, i32) {
    %c0_i32 = arith.constant 0 : i32
    %c0_i32_0 = arith.constant 0 : i32
    %c0_i32_1 = arith.constant 0 : i32
    return %c0_i32, %c0_i32_0 : i32, i32
  }
  func.func @transform_5(%arg0: i32) -> (i32, i32) {
    %c0_i32 = arith.constant 0 : i32
    %c0_i32_0 = arith.constant 0 : i32
    %c0_i32_1 = arith.constant 0 : i32
    return %c0_i32, %c0_i32_0 : i32, i32
  }
  func.func @transform_6(%arg0: i32) -> (i32, i32) {
    %c0_i32 = arith.constant 0 : i32
    %c0_i32_0 = arith.constant 0 : i32
    %c0_i32_1 = arith.constant 0 : i32
    return %c0_i32, %c0_i32_0 : i32, i32
  }
  func.func @transform_7(%arg0: i32) -> (i32, i32) {
    %c0_i32 = arith.constant 0 : i32
    %c0_i32_0 = arith.constant 0 : i32
    %c0_i32_1 = arith.constant 0 : i32
    return %c0_i32, %c0_i32_0 : i32, i32
  }
  func.func @transform_8(%arg0: i32) -> (i32, i32) {
    %c0_i32 = arith.constant 0 : i32
    %c0_i32_0 = arith.constant 0 : i32
    %c0_i32_1 = arith.constant 0 : i32
    return %c0_i32, %c0_i32_0 : i32, i32
  }
  func.func @transform_9(%arg0: i32) -> (i32, i32) {
    %c0_i32 = arith.constant 0 : i32
    %c0_i32_0 = arith.constant 0 : i32
    return %arg0, %c0_i32 : i32, i32
  }
}

</mosaic_0001>

<bundles_post_ra>
// kernel: tpu_custom_call.1
= control target key start
LH: loop header
LB: loop body
LE: loop exit
PB: predicated region body
PF: predicated region fallthrough
CT: control target
= control target key end

     0   :  { %14 = vsyncpa [#allocation3], 0  ;;  %s878_s0 = inlined_call_operand.hbm [shape: bf16[8,128], index: 0, kind: input, shape index: {}]   ;;  %s879_s1 = inlined_call_operand.hbm [shape: bf16[128,128], index: 1, kind: input, shape index: {}]   ;;  %s880_s2 = inlined_call_operand.vmem [shape: f32[1,128], index: 2, kind: input, shape index: {}]   ;;  %s881_s3 = inlined_call_operand.hbm [shape: bf16[128,128], index: 3, kind: input, shape index: {}]   ;;  %s882_s4 = inlined_call_operand.vmem [shape: f32[1,128], index: 4, kind: input, shape index: {}]   ;;  %s883_s5 = inlined_call_operand.hbm [shape: bf16[128,128], index: 5, kind: input, shape index: {}]   ;;  %s884_s6 = inlined_call_operand.vmem [shape: f32[1,128], index: 6, kind: input, shape index: {}]   ;;  %s885_s7 = inlined_call_operand.hbm [shape: bf16[128,128], index: 7, kind: input, shape index: {}]   ;;  %s886_s8 = inlined_call_operand.vmem [shape: f32[1,128], index: 8, kind: input, shape index: {}]   ;;  %s887_s9 = inlined_call_operand.hbm [shape: f32[8,128], index: 9, kind: output, shape index: {}]  }
   0x1   :  { %15 = vsyncpa [#allocation6], 0 }
   0x2   :  { %16 = vsyncpa [#allocation9], 0  ;;  %s33_s11 = sshll.u32 %s879_s1, 4  ;;  %s34_s11 = int_to_ptr.hbm [resolvable:$true] %s33_s11 }
   0x3   :  { %17 = vsyncpa [#allocation4], 0  ;;  %s790_s12 = smov [#allocation5]   ;;  %s63_s16 = sshll.u32 %s883_s5, 4  ;;  %s64_s16 = int_to_ptr.hbm [resolvable:$true] %s63_s16 }
   0x4   :  { %s35_s13 = sshll.u32 %s790_s12, 4  ;;  %s791_s17 = smov 64   ;;  %s36_s13 = int_to_ptr.vmem [resolvable:$true] %s35_s13 }
   0x5   :  { %s792_s18 = smov 4   ;;  %s793_s19 = smov [#allocation8]  }
   0x6   :  { %41 = dma.hbm_to_vmem [thread:$0]  %s34_s11, 1024, %s36_s13, [#allocation6], %s791_s17, %s791_s17, %s792_s18  }
   0x7   :  { %s65_s20 = sshll.u32 %s793_s19, 4  ;;  %s23_s23 = sshll.u32 %s878_s0, 4  ;;  %s66_s20 = int_to_ptr.vmem [resolvable:$true] %s65_s20  ;;  %s24_s23 = int_to_ptr.hbm [resolvable:$true] %s23_s23 }
   0x8   :  { %71 = dma.hbm_to_vmem [thread:$0]  %s64_s16, 1024, %s66_s20, [#allocation9], %s791_s17, %s791_s17, %s792_s18  }
   0x9   :  { %s48_s25 = sshll.u32 %s881_s3, 4  ;;  %s794_s26 = smov [#allocation2]   ;;  %s49_s25 = int_to_ptr.hbm [resolvable:$true] %s48_s25 }
   0xa   :  { %s25_s27 = sshll.u32 %s794_s26, 4  ;;  %s795_s5 = smov [#allocation7]   ;;  %s26_s27 = int_to_ptr.vmem [resolvable:$true] %s25_s27 }
   0xb   :  { %28 = dma.hbm_to_vmem [thread:$0]  %s24_s23, 64, %s26_s27, [#allocation3]  }
   0xc   :  { %s50_s28 = sshll.u32 %s795_s5, 4  ;;  %s78_s10 = sshll.u32 %s885_s7, 4  ;;  %s51_s28 = int_to_ptr.vmem [resolvable:$true] %s50_s28  ;;  %s79_s10 = int_to_ptr.hbm [resolvable:$true] %s78_s10 }
   0xd   :  { %56 = dma.hbm_to_vmem [thread:$0]  %s49_s25, 1024, %s51_s28, [#allocation6], %s791_s17, %s791_s17, %s792_s18  }
   0xe   :  { %s796_s0 = smov [#allocation10]  }
   0xf   :  { %s80_s11 = sshll.u32 %s796_s0, 4  ;;  %s81_s11 = int_to_ptr.vmem [resolvable:$true] %s80_s11 }
  0x10   :  { %86 = dma.hbm_to_vmem [thread:$0]  %s79_s10, 1024, %s81_s11, [#allocation9], %s791_s17, %s791_s17, %s792_s18  }
  0x11   :  { %782 = dma.done.wait [#allocation3], 64  }
  0x12   :  { %783 = vsyncadd [#allocation3], 4294967232 }
  0x13   :  { %784 = dma.done.wait [#allocation6], 2048  }
  0x14   :  { %785 = vsyncadd [#allocation6], 4294965248 }
  0x15   :  { %786 = dma.done.wait [#allocation9], 2048  }
  0x16   :  { %787 = vsyncadd [#allocation9], 4294965248  ;;  %v601_v0 = vld [vmem:[#allocation5 + $0x38] sm:$0xff]  ;;  %v600_v1 = vld [vmem:[#allocation5 + $0x30] sm:$0xff]  ;;  %s797_s16 = smov [#allocation11]   ;;  %s454_s20 = sshll.u32 %s887_s9, 4  ;;  %s455_s20 = int_to_ptr.hbm [resolvable:$true] %s454_s20 }
  0x17   :  { %178 = vmatpush.bf16.msra.mxu0 %v601_v0  ;;  %v609_v2 = vld [vmem:[#allocation7 + $0x38] sm:$0xff]  ;;  %v608_v3 = vld [vmem:[#allocation7 + $0x30] sm:$0xff]  ;;  %v599_v4 = vld [vmem:[#allocation5 + $0x28] sm:$0xff]  ;;  %s452_s17 = sshll.u32 %s797_s16, 4  ;;  %s453_s17 = int_to_ptr.vmem [resolvable:$true] %s452_s17 }
  0x18   :  { %263 = vmatpush.bf16.msra.mxu1 %v609_v2  ;;  %v607_v5 = vld [vmem:[#allocation7 + $0x28] sm:$0xff]  ;;  %v598_v6 = vld [vmem:[#allocation5 + $0x20] sm:$0xff]  ;;  %v597_v8 = vld [vmem:[#allocation5 + $0x18] sm:$0xff] }
  0x19   :  { %v606_v7 = vld [vmem:[#allocation7 + $0x20] sm:$0xff]  ;;  %v605_v9 = vld [vmem:[#allocation7 + $0x18] sm:$0xff]  ;;  %v596_v10 = vld [vmem:[#allocation5 + $0x10] sm:$0xff] }
  0x1a   :  { %v604_v11 = vld [vmem:[#allocation7 + $0x10] sm:$0xff]  ;;  %v595_v12 = vld [vmem:[#allocation5 + $0x8] sm:$0xff]  ;;  %v594_v13 = vld [vmem:[#allocation5] sm:$0xff] }
  0x1b   :  { %179 = vmatpush.bf16.msra.mxu0 %v600_v1  ;;  %v109_v14 = vld [vmem:[#allocation2] sm:$0xf]  ;;  %v603_v15 = vld [vmem:[#allocation7 + $0x8] sm:$0xff]  ;;  %v602_v16 = vld [vmem:[#allocation7] sm:$0xff] }
  0x1c   :  { %264 = vmatpush.bf16.msra.mxu1 %v608_v3  ;;  %v617_v17 = vld [vmem:[#allocation8 + $0x38] sm:$0xff]  ;;  %v616_v18 = vld [vmem:[#allocation8 + $0x30] sm:$0xff]  ;;  %v615_v19 = vld [vmem:[#allocation8 + $0x28] sm:$0xff] }
  0x1d   :  { %348 = vmatpush.bf16.msra.mxu2 %v617_v17  ;;  %v614_v20 = vld [vmem:[#allocation8 + $0x20] sm:$0xff]  ;;  %v613_v21 = vld [vmem:[#allocation8 + $0x18] sm:$0xff]  ;;  %v612_v22 = vld [vmem:[#allocation8 + $0x10] sm:$0xff] }
  0x1e   :  { %v634_v23 = vld [vmem:[%s880_s2] ss:$0 sm:$0xff]  ;;  %v611_v30 = vld [vmem:[#allocation8 + $0x8] sm:$0xff]  ;;  %v610_v31 = vld [vmem:[#allocation8] sm:$0xff] }
  0x1f   :  { %180 = vmatpush.bf16.msra.mxu0 %v599_v4  ;;  %v625_v32 = vld [vmem:[#allocation10 + $0x38] sm:$0xff]  ;;  %v624_v33 = vld [vmem:[#allocation10 + $0x30] sm:$0xff]  ;;  %v623_v34 = vld [vmem:[#allocation10 + $0x28] sm:$0xff] }
  0x20   :  { %265 = vmatpush.bf16.msra.mxu1 %v607_v5  ;;  %433 = vmatpush.bf16.msra.mxu3 %v625_v32  ;;  %v622_v35 = vld [vmem:[#allocation10 + $0x20] sm:$0xff]  ;;  %v621_v36 = vld [vmem:[#allocation10 + $0x18] sm:$0xff]  ;;  %v620_v37 = vld [vmem:[#allocation10 + $0x10] sm:$0xff] }
  0x21   :  { %349 = vmatpush.bf16.msra.mxu2 %v616_v18  ;;  %v635_v38 = vld [vmem:[%s882_s4] ss:$0 sm:$0xff]  ;;  %v619_v45 = vld [vmem:[#allocation10 + $0x8] sm:$0xff]  ;;  %v618_v46 = vld [vmem:[#allocation10] sm:$0xff] }
  0x22   :  { %v636_v47 = vld [vmem:[%s884_s6] ss:$0 sm:$0xff] }
  0x23   :  { %181 = vmatpush.bf16.msra.mxu0 %v598_v6  ;;  %v637_v54 = vld [vmem:[%s886_s8] ss:$0 sm:$0xff] }
  0x24   :  { %266 = vmatpush.bf16.msra.mxu1 %v606_v7  ;;  %434 = vmatpush.bf16.msra.mxu3 %v624_v33 }
  0x25   :  { %350 = vmatpush.bf16.msra.mxu2 %v615_v19 }
  0x27   :  { %182 = vmatpush.bf16.msra.mxu0 %v597_v8 }
  0x28   :  { %267 = vmatpush.bf16.msra.mxu1 %v605_v9  ;;  %435 = vmatpush.bf16.msra.mxu3 %v623_v34 }
  0x29   :  { %351 = vmatpush.bf16.msra.mxu2 %v614_v20 }
  0x2b   :  { %183 = vmatpush.bf16.msra.mxu0 %v596_v10 }
  0x2c   :  { %268 = vmatpush.bf16.msra.mxu1 %v604_v11  ;;  %436 = vmatpush.bf16.msra.mxu3 %v622_v35 }
  0x2d   :  { %352 = vmatpush.bf16.msra.mxu2 %v613_v21 }
  0x2f   :  { %184 = vmatpush.bf16.msra.mxu0 %v595_v12 }
  0x30   :  { %269 = vmatpush.bf16.msra.mxu1 %v603_v15  ;;  %437 = vmatpush.bf16.msra.mxu3 %v621_v36 }
  0x31   :  { %353 = vmatpush.bf16.msra.mxu2 %v612_v22 }
  0x33   :  { %185 = vmatpush.bf16.msra.mxu0 %v594_v13 }
  0x34   :  { %270 = vmatpush.bf16.msra.mxu1 %v602_v16  ;;  %438 = vmatpush.bf16.msra.mxu3 %v620_v37 }
  0x35   :  { %354 = vmatpush.bf16.msra.mxu2 %v611_v30 }
  0x36   :  { %186 = vmatmul.bf16.vlgmr.msra.gmra.mxu0 %v109_v14 }
  0x38   :  { %439 = vmatpush.bf16.msra.mxu3 %v619_v45 }
  0x39   :  { %355 = vmatpush.bf16.msra.mxu2 %v610_v31 }
  0x3c   :  { %440 = vmatpush.bf16.msra.mxu3 %v618_v46 }
  0xb3   :  { %v187_v24 = vpop.f32.mrf.mxu0 }
  0xb4   :  { %v188_v25 = vadd.f32 %v634_v23, %v187_v24 }
  0xb6   :  { %v192_v26 = vmul.f32 0.2, %v188_v25  ;;  %vm191_vm0 = vcmp.ge.f32.partialorder %v188_v25, 0.0 }
  0xb8   :  { %v193_v27 = vsel %vm191_vm0, %v188_v25, %v192_v26 }
  0xb9   :  { %v194_v28 = vpack.c.bf16 %v193_v27, %v193_v27 }
  0xbb   :  { %v189_v29 = vpop.f32.mrf.mxu0  ;;  %271 = vmatmul.bf16.vlgmr.msra.gmra.mxu1 %v194_v28 }
 0x138   :  { %v272_v39 = vpop.f32.mrf.mxu1 }
 0x139   :  { %v273_v40 = vadd.f32 %v635_v38, %v272_v39 }
 0x13b   :  { %v277_v41 = vmul.f32 0.2, %v273_v40  ;;  %vm276_vm1 = vcmp.ge.f32.partialorder %v273_v40, 0.0 }
 0x13d   :  { %v278_v42 = vsel %vm276_vm1, %v273_v40, %v277_v41 }
 0x13e   :  { %v279_v43 = vpack.c.bf16 %v278_v42, %v278_v42 }
 0x140   :  { %v274_v44 = vpop.f32.mrf.mxu1  ;;  %356 = vmatmul.bf16.vlgmr.msra.gmra.mxu2 %v279_v43 }
 0x1c3   :  { %v357_v48 = vpop.f32.mrf.mxu2 }
 0x1c4   :  { %v358_v49 = vadd.f32 %v636_v47, %v357_v48 }
 0x1c6   :  { %v362_v50 = vmul.f32 0.2, %v358_v49  ;;  %vm361_vm2 = vcmp.ge.f32.partialorder %v358_v49, 0.0 }
 0x1c8   :  { %v363_v51 = vsel %vm361_vm2, %v358_v49, %v362_v50 }
 0x1c9   :  { %v364_v52 = vpack.c.bf16 %v363_v51, %v363_v51 }
 0x1cb   :  { %v359_v53 = vpop.f32.mrf.mxu2  ;;  %441 = vmatmul.bf16.vlgmr.msra.gmra.mxu3 %v364_v52 }
 0x24e   :  { %v442_v55 = vpop.f32.mrf.mxu3 }
 0x24f   :  { %v443_v56 = vadd.f32 %v637_v54, %v442_v55 }
 0x251   :  { %446 = vst [vmem:[#allocation11] sm:$0xff] %v443_v56 }
 0x252   :  { %457 = dma.vmem_to_hbm [thread:$0]  %s453_s17, 128, %s455_s20, [#allocation4]  }
 0x256   :  { %v444_v57 = vpop.f32.mrf.mxu3 }
 0x257   :  { %788 = dma.done.wait [#allocation4], 128  }
 0x258   :  { %789 = vsyncadd [#allocation4], 4294967168 }
 0x259   :  { %462 = vsyncpa [#allocation3], 1 }
 0x25a   :  { %463 = vsyncpa [#allocation6], 1 }
 0x25b   :  { %464 = vsyncpa [#allocation9], 1 }
 0x25c   :  { %465 = vsyncpa [#allocation4], 1 }

// kernel: tpu_custom_call.1
= control target key start
LH: loop header
LB: loop body
LE: loop exit
PB: predicated region body
PF: predicated region fallthrough
CT: control target
= control target key end

     0   :  { %14 = vsyncpa [#allocation3], 0  ;;  %s878_s0 = inlined_call_operand.hbm [shape: bf16[8,128], index: 0, kind: input, shape index: {}]   ;;  %s879_s1 = inlined_call_operand.hbm [shape: bf16[128,128], index: 1, kind: input, shape index: {}]   ;;  %s880_s2 = inlined_call_operand.vmem [shape: f32[1,128], index: 2, kind: input, shape index: {}]   ;;  %s881_s3 = inlined_call_operand.hbm [shape: bf16[128,128], index: 3, kind: input, shape index: {}]   ;;  %s882_s4 = inlined_call_operand.vmem [shape: f32[1,128], index: 4, kind: input, shape index: {}]   ;;  %s883_s5 = inlined_call_operand.hbm [shape: bf16[128,128], index: 5, kind: input, shape index: {}]   ;;  %s884_s6 = inlined_call_operand.vmem [shape: f32[1,128], index: 6, kind: input, shape index: {}]   ;;  %s885_s7 = inlined_call_operand.hbm [shape: bf16[128,128], index: 7, kind: input, shape index: {}]   ;;  %s886_s8 = inlined_call_operand.vmem [shape: f32[1,128], index: 8, kind: input, shape index: {}]   ;;  %s887_s9 = inlined_call_operand.hbm [shape: f32[8,128], index: 9, kind: output, shape index: {}]  }
   0x1   :  { %15 = vsyncpa [#allocation6], 0 }
   0x2   :  { %16 = vsyncpa [#allocation9], 0  ;;  %s33_s11 = sshll.u32 %s879_s1, 4  ;;  %s34_s11 = int_to_ptr.hbm [resolvable:$true] %s33_s11 }
   0x3   :  { %17 = vsyncpa [#allocation4], 0  ;;  %s790_s12 = smov [#allocation5]   ;;  %s63_s16 = sshll.u32 %s883_s5, 4  ;;  %s64_s16 = int_to_ptr.hbm [resolvable:$true] %s63_s16 }
   0x4   :  { %s35_s13 = sshll.u32 %s790_s12, 4  ;;  %s791_s17 = smov 64   ;;  %s36_s13 = int_to_ptr.vmem [resolvable:$true] %s35_s13 }
   0x5   :  { %s792_s18 = smov 4   ;;  %s793_s19 = smov [#allocation8]  }
   0x6   :  { %41 = dma.hbm_to_vmem [thread:$0]  %s34_s11, 1024, %s36_s13, [#allocation6], %s791_s17, %s791_s17, %s792_s18  }
   0x7   :  { %s65_s20 = sshll.u32 %s793_s19, 4  ;;  %s23_s23 = sshll.u32 %s878_s0, 4  ;;  %s66_s20 = int_to_ptr.vmem [resolvable:$true] %s65_s20  ;;  %s24_s23 = int_to_ptr.hbm [resolvable:$true] %s23_s23 }
   0x8   :  { %71 = dma.hbm_to_vmem [thread:$0]  %s64_s16, 1024, %s66_s20, [#allocation9], %s791_s17, %s791_s17, %s792_s18  }
   0x9   :  { %s48_s25 = sshll.u32 %s881_s3, 4  ;;  %s794_s26 = smov [#allocation2]   ;;  %s49_s25 = int_to_ptr.hbm [resolvable:$true] %s48_s25 }
   0xa   :  { %s25_s27 = sshll.u32 %s794_s26, 4  ;;  %s795_s5 = smov [#allocation7]   ;;  %s26_s27 = int_to_ptr.vmem [resolvable:$true] %s25_s27 }
   0xb   :  { %28 = dma.hbm_to_vmem [thread:$0]  %s24_s23, 64, %s26_s27, [#allocation3]  }
   0xc   :  { %s50_s28 = sshll.u32 %s795_s5, 4  ;;  %s78_s10 = sshll.u32 %s885_s7, 4  ;;  %s51_s28 = int_to_ptr.vmem [resolvable:$true] %s50_s28  ;;  %s79_s10 = int_to_ptr.hbm [resolvable:$true] %s78_s10 }
   0xd   :  { %56 = dma.hbm_to_vmem [thread:$0]  %s49_s25, 1024, %s51_s28, [#allocation6], %s791_s17, %s791_s17, %s792_s18  }
   0xe   :  { %s796_s0 = smov [#allocation10]  }
   0xf   :  { %s80_s11 = sshll.u32 %s796_s0, 4  ;;  %s81_s11 = int_to_ptr.vmem [resolvable:$true] %s80_s11 }
  0x10   :  { %86 = dma.hbm_to_vmem [thread:$0]  %s79_s10, 1024, %s81_s11, [#allocation9], %s791_s17, %s791_s17, %s792_s18  }
  0x11   :  { %782 = dma.done.wait [#allocation3], 64  }
  0x12   :  { %783 = vsyncadd [#allocation3], 4294967232 }
  0x13   :  { %784 = dma.done.wait [#allocation6], 2048  }
  0x14   :  { %785 = vsyncadd [#allocation6], 4294965248 }
  0x15   :  { %786 = dma.done.wait [#allocation9], 2048  }
  0x16   :  { %787 = vsyncadd [#allocation9], 4294965248  ;;  %v601_v0 = vld [vmem:[#allocation5 + $0x38] sm:$0xff]  ;;  %v600_v1 = vld [vmem:[#allocation5 + $0x30] sm:$0xff]  ;;  %s797_s16 = smov [#allocation11]   ;;  %s454_s20 = sshll.u32 %s887_s9, 4  ;;  %s455_s20 = int_to_ptr.hbm [resolvable:$true] %s454_s20 }
  0x17   :  { %178 = vmatpush.bf16.msra.mxu0 %v601_v0  ;;  %v609_v2 = vld [vmem:[#allocation7 + $0x38] sm:$0xff]  ;;  %v608_v3 = vld [vmem:[#allocation7 + $0x30] sm:$0xff]  ;;  %v599_v4 = vld [vmem:[#allocation5 + $0x28] sm:$0xff]  ;;  %s452_s17 = sshll.u32 %s797_s16, 4  ;;  %s453_s17 = int_to_ptr.vmem [resolvable:$true] %s452_s17 }
  0x18   :  { %263 = vmatpush.bf16.msra.mxu1 %v609_v2  ;;  %v607_v5 = vld [vmem:[#allocation7 + $0x28] sm:$0xff]  ;;  %v598_v6 = vld [vmem:[#allocation5 + $0x20] sm:$0xff]  ;;  %v597_v8 = vld [vmem:[#allocation5 + $0x18] sm:$0xff] }
  0x19   :  { %v606_v7 = vld [vmem:[#allocation7 + $0x20] sm:$0xff]  ;;  %v605_v9 = vld [vmem:[#allocation7 + $0x18] sm:$0xff]  ;;  %v596_v10 = vld [vmem:[#allocation5 + $0x10] sm:$0xff] }
  0x1a   :  { %v604_v11 = vld [vmem:[#allocation7 + $0x10] sm:$0xff]  ;;  %v595_v12 = vld [vmem:[#allocation5 + $0x8] sm:$0xff]  ;;  %v594_v13 = vld [vmem:[#allocation5] sm:$0xff] }
  0x1b   :  { %179 = vmatpush.bf16.msra.mxu0 %v600_v1  ;;  %v109_v14 = vld [vmem:[#allocation2] sm:$0xf]  ;;  %v603_v15 = vld [vmem:[#allocation7 + $0x8] sm:$0xff]  ;;  %v602_v16 = vld [vmem:[#allocation7] sm:$0xff] }
  0x1c   :  { %264 = vmatpush.bf16.msra.mxu1 %v608_v3  ;;  %v617_v17 = vld [vmem:[#allocation8 + $0x38] sm:$0xff]  ;;  %v616_v18 = vld [vmem:[#allocation8 + $0x30] sm:$0xff]  ;;  %v615_v19 = vld [vmem:[#allocation8 + $0x28] sm:$0xff] }
  0x1d   :  { %348 = vmatpush.bf16.msra.mxu2 %v617_v17  ;;  %v614_v20 = vld [vmem:[#allocation8 + $0x20] sm:$0xff]  ;;  %v613_v21 = vld [vmem:[#allocation8 + $0x18] sm:$0xff]  ;;  %v612_v22 = vld [vmem:[#allocation8 + $0x10] sm:$0xff] }
  0x1e   :  { %v634_v23 = vld [vmem:[%s880_s2] ss:$0 sm:$0xff]  ;;  %v611_v30 = vld [vmem:[#allocation8 + $0x8] sm:$0xff]  ;;  %v610_v31 = vld [vmem:[#allocation8] sm:$0xff] }
  0x1f   :  { %180 = vmatpush.bf16.msra.mxu0 %v599_v4  ;;  %v625_v32 = vld [vmem:[#allocation10 + $0x38] sm:$0xff]  ;;  %v624_v33 = vld [vmem:[#allocation10 + $0x30] sm:$0xff]  ;;  %v623_v34 = vld [vmem:[#allocation10 + $0x28] sm:$0xff] }
  0x20   :  { %265 = vmatpush.bf16.msra.mxu1 %v607_v5  ;;  %433 = vmatpush.bf16.msra.mxu3 %v625_v32  ;;  %v622_v35 = vld [vmem:[#allocation10 + $0x20] sm:$0xff]  ;;  %v621_v36 = vld [vmem:[#allocation10 + $0x18] sm:$0xff]  ;;  %v620_v37 = vld [vmem:[#allocation10 + $0x10] sm:$0xff] }
  0x21   :  { %349 = vmatpush.bf16.msra.mxu2 %v616_v18  ;;  %v635_v38 = vld [vmem:[%s882_s4] ss:$0 sm:$0xff]  ;;  %v619_v45 = vld [vmem:[#allocation10 + $0x8] sm:$0xff]  ;;  %v618_v46 = vld [vmem:[#allocation10] sm:$0xff] }
  0x22   :  { %v636_v47 = vld [vmem:[%s884_s6] ss:$0 sm:$0xff] }
  0x23   :  { %181 = vmatpush.bf16.msra.mxu0 %v598_v6  ;;  %v637_v54 = vld [vmem:[%s886_s8] ss:$0 sm:$0xff] }
  0x24   :  { %266 = vmatpush.bf16.msra.mxu1 %v606_v7  ;;  %434 = vmatpush.bf16.msra.mxu3 %v624_v33 }
  0x25   :  { %350 = vmatpush.bf16.msra.mxu2 %v615_v19 }
  0x27   :  { %182 = vmatpush.bf16.msra.mxu0 %v597_v8 }
  0x28   :  { %267 = vmatpush.bf16.msra.mxu1 %v605_v9  ;;  %435 = vmatpush.bf16.msra.mxu3 %v623_v34 }
  0x29   :  { %351 = vmatpush.bf16.msra.mxu2 %v614_v20 }
  0x2b   :  { %183 = vmatpush.bf16.msra.mxu0 %v596_v10 }
  0x2c   :  { %268 = vmatpush.bf16.msra.mxu1 %v604_v11  ;;  %436 = vmatpush.bf16.msra.mxu3 %v622_v35 }
  0x2d   :  { %352 = vmatpush.bf16.msra.mxu2 %v613_v21 }
  0x2f   :  { %184 = vmatpush.bf16.msra.mxu0 %v595_v12 }
  0x30   :  { %269 = vmatpush.bf16.msra.mxu1 %v603_v15  ;;  %437 = vmatpush.bf16.msra.mxu3 %v621_v36 }
  0x31   :  { %353 = vmatpush.bf16.msra.mxu2 %v612_v22 }
  0x33   :  { %185 = vmatpush.bf16.msra.mxu0 %v594_v13 }
  0x34   :  { %270 = vmatpush.bf16.msra.mxu1 %v602_v16  ;;  %438 = vmatpush.bf16.msra.mxu3 %v620_v37 }
  0x35   :  { %354 = vmatpush.bf16.msra.mxu2 %v611_v30 }
  0x36   :  { %186 = vmatmul.bf16.vlgmr.msra.gmra.mxu0 %v109_v14 }
  0x38   :  { %439 = vmatpush.bf16.msra.mxu3 %v619_v45 }
  0x39   :  { %355 = vmatpush.bf16.msra.mxu2 %v610_v31 }
  0x3c   :  { %440 = vmatpush.bf16.msra.mxu3 %v618_v46 }
  0xb3   :  { %v187_v24 = vpop.f32.mrf.mxu0 }
  0xb4   :  { %v188_v25 = vadd.f32 %v634_v23, %v187_v24 }
  0xb6   :  { %v192_v26 = vmul.f32 0.2, %v188_v25  ;;  %vm191_vm0 = vcmp.ge.f32.partialorder %v188_v25, 0.0 }
  0xb8   :  { %v193_v27 = vsel %vm191_vm0, %v188_v25, %v192_v26 }
  0xb9   :  { %v194_v28 = vpack.c.bf16 %v193_v27, %v193_v27 }
  0xbb   :  { %v189_v29 = vpop.f32.mrf.mxu0  ;;  %271 = vmatmul.bf16.vlgmr.msra.gmra.mxu1 %v194_v28 }
 0x138   :  { %v272_v39 = vpop.f32.mrf.mxu1 }
 0x139   :  { %v273_v40 = vadd.f32 %v635_v38, %v272_v39 }
 0x13b   :  { %v277_v41 = vmul.f32 0.2, %v273_v40  ;;  %vm276_vm1 = vcmp.ge.f32.partialorder %v273_v40, 0.0 }
 0x13d   :  { %v278_v42 = vsel %vm276_vm1, %v273_v40, %v277_v41 }
 0x13e   :  { %v279_v43 = vpack.c.bf16 %v278_v42, %v278_v42 }
 0x140   :  { %v274_v44 = vpop.f32.mrf.mxu1  ;;  %356 = vmatmul.bf16.vlgmr.msra.gmra.mxu2 %v279_v43 }
 0x1c3   :  { %v357_v48 = vpop.f32.mrf.mxu2 }
 0x1c4   :  { %v358_v49 = vadd.f32 %v636_v47, %v357_v48 }
 0x1c6   :  { %v362_v50 = vmul.f32 0.2, %v358_v49  ;;  %vm361_vm2 = vcmp.ge.f32.partialorder %v358_v49, 0.0 }
 0x1c8   :  { %v363_v51 = vsel %vm361_vm2, %v358_v49, %v362_v50 }
 0x1c9   :  { %v364_v52 = vpack.c.bf16 %v363_v51, %v363_v51 }
 0x1cb   :  { %v359_v53 = vpop.f32.mrf.mxu2  ;;  %441 = vmatmul.bf16.vlgmr.msra.gmra.mxu3 %v364_v52 }
 0x24e   :  { %v442_v55 = vpop.f32.mrf.mxu3 }
 0x24f   :  { %v443_v56 = vadd.f32 %v637_v54, %v442_v55 }
 0x251   :  { %446 = vst [vmem:[#allocation11] sm:$0xff] %v443_v56 }
 0x252   :  { %457 = dma.vmem_to_hbm [thread:$0]  %s453_s17, 128, %s455_s20, [#allocation4]  }
 0x256   :  { %v444_v57 = vpop.f32.mrf.mxu3 }
 0x257   :  { %788 = dma.done.wait [#allocation4], 128  }
 0x258   :  { %789 = vsyncadd [#allocation4], 4294967168 }
 0x259   :  { %462 = vsyncpa [#allocation3], 1 }
 0x25a   :  { %463 = vsyncpa [#allocation6], 1 }
 0x25b   :  { %464 = vsyncpa [#allocation9], 1 }
 0x25c   :  { %465 = vsyncpa [#allocation4], 1 }

</bundles_post_ra>
